<compile_context>
chip_gen: v7x
topology: tpu7x:2x2x1
jax: 0.10.0
libtpu: 0.0.40
codegen_flags: <defaults>
</compile_context>

<pallas_src>
import jax
import jax.numpy as jnp
from jax.experimental import pallas as pl
from jax.experimental.pallas import tpu as pltpu


def se_kernel(x_ref, w1_ref, b1_ref, w2t_ref, b2_ref, wc_ref, o_ref):
    x = x_ref[...]                                            # (C, S) f32
    S = x.shape[1]

    # --- squeeze: spatial mean, landed directly as a (1, C) row ------------
    # MXU contraction over the lane axis (same dimension-number pattern as
    # q @ k^T), avoiding both a (C,1)->(1,C) transpose and an N=1 matvec.
    scale = jnp.full((1, S), 1.0 / S, dtype=jnp.float32)
    sq_row = jax.lax.dot_general(
        scale, x, (((1,), (1,)), ((), ())),
        preferred_element_type=jnp.float32)                   # (1, C)

    # --- fc1 + ReLU on VPU/XLU: (Cr,C)*(1,C) -> lane-reduce -> (Cr,1) ------
    h_col = jnp.sum(w1_ref[...] * sq_row, axis=1, keepdims=True) + b1_ref[...]
    h_col = jnp.maximum(h_col, 0.0)                           # (Cr, 1)

    # --- fc2 + sigmoid: (Cr,C)*(Cr,1) -> sublane-reduce -> (1,C) -----------
    g_row = jnp.sum(w2t_ref[...] * h_col, axis=0, keepdims=True) + b2_ref[...]
    g_row = jax.nn.sigmoid(g_row)                             # (1, C)

    # --- fold the gate into the 1x1-conv weight: out = (Wc·diag(g))·x ------
    wc_scaled = wc_ref[...] * g_row                           # (Co_pad, C)

    # --- single lane-dense MXU matmul per batch ----------------------------
    o_ref[...] = jnp.dot(wc_scaled, x,
                         preferred_element_type=jnp.float32).astype(o_ref.dtype)


def channel_se_layer(x, w1, b1, w2, b2, wc):
    """x: (B, C, H, W) float32 (NCHW). Returns (B, C//2, H, W)."""
    B, C, H, W = x.shape
    S = H * W
    Cr = w1.shape[0]
    Co = wc.shape[0]

    # Free, contiguous reshape (no HBM transpose).
    x3 = x.reshape(B, C, S)

    # Tiny, layout-only parameter prep (no batch expansion, O(C*Cr)/O(Co*C)).
    w2t = w2.T                                   # (Cr, C)
    b1c = b1.reshape(Cr, 1)                      # (Cr, 1)
    b2r = b2.reshape(1, C)                       # (1,  C)
    co_pad = ((Co + 7) // 8) * 8                 # sublane-dense output store
    wc_p = wc if co_pad == Co else jnp.pad(wc, ((0, co_pad - Co), (0, 0)))

    itemsize = jnp.dtype(x.dtype).itemsize
    bytes_accessed = itemsize * (
        B * C * S + B * co_pad * S
        + w1.size + b1c.size + w2t.size + b2r.size + wc_p.size)
    flops = B * (2 * C * S                       # squeeze contraction
                 + 4 * Cr * C                    # fc1 + fc2
                 + co_pad * C                    # gate fold into Wc
                 + 2 * co_pad * C * S)           # 1x1 conv matmul (dominant)

    out_padded = pl.pallas_call(
        se_kernel,
        out_shape=jax.ShapeDtypeStruct((B, co_pad, S), x.dtype),
        grid=(B,),
        in_specs=[
            # One batch slab per step; trailing dims are the full array dims.
            pl.BlockSpec((None, C, S), lambda b: (b, 0, 0)),
            # Weights/biases: constant block index -> fetched once, resident.
            pl.BlockSpec((Cr, C), lambda b: (0, 0)),      # w1
            pl.BlockSpec((Cr, 1), lambda b: (0, 0)),      # b1 (column)
            pl.BlockSpec((Cr, C), lambda b: (0, 0)),      # w2^T
            pl.BlockSpec((1, C), lambda b: (0, 0)),       # b2 (row)
            pl.BlockSpec((co_pad, C), lambda b: (0, 0)),  # wc (row-padded)
        ],
        out_specs=pl.BlockSpec((None, co_pad, S), lambda b: (b, 0, 0)),
        compiler_params=pltpu.CompilerParams(
            dimension_semantics=("parallel",),
            vmem_limit_bytes=32 * 1024 * 1024),
        cost_estimate=pl.CostEstimate(
            flops=flops, transcendentals=B * C, bytes_accessed=bytes_accessed),
    )(x3, w1, b1c, w2t, b2r, wc_p)

    return out_padded[:, :Co, :].reshape(B, Co, H, W)


def channel_se_reference(x, w1, b1, w2, b2, wc):
    """Pure-JAX reference matching the PyTorch forward exactly."""
    B, C, H, W = x.shape
    sq = x.reshape(B, C, -1).mean(axis=2)               # (B, C)
    h = jax.nn.relu(sq @ w1.T + b1)                     # (B, Cr)
    g = jax.nn.sigmoid(h @ w2.T + b2)                   # (B, C)
    y = x * g[:, :, None, None]                         # (B, C, H, W)
    out = jnp.einsum("oc,bchw->bohw", wc, y)            # 1x1 conv, no bias
    return out


if __name__ == "__main__":
    # Module configuration (small, consistent with the forward pass)
    B, C, H, W = 2, 8, 16, 16
    reduction_ratio = 4
    Cr = C // reduction_ratio      # fc hidden width
    Co = C // 2                    # conv_reduce output channels

    key = jax.random.PRNGKey(0)
    k_x, k_w1, k_b1, k_w2, k_b2, k_wc = jax.random.split(key, 6)

    x = jax.random.normal(k_x, (B, C, H, W), dtype=jnp.float32)

    # Deterministic parameter init (shapes mirror the PyTorch module):
    # fc1: Linear(C -> Cr), fc2: Linear(Cr -> C), conv_reduce: Conv2d(C -> C//2, k=1, no bias)
    w1 = jax.random.normal(k_w1, (Cr, C), dtype=jnp.float32) * (1.0 / jnp.sqrt(C))
    b1 = jax.random.normal(k_b1, (Cr,), dtype=jnp.float32) * (1.0 / jnp.sqrt(C))
    w2 = jax.random.normal(k_w2, (C, Cr), dtype=jnp.float32) * (1.0 / jnp.sqrt(Cr))
    b2 = jax.random.normal(k_b2, (C,), dtype=jnp.float32) * (1.0 / jnp.sqrt(Cr))
    wc = jax.random.normal(k_wc, (Co, C), dtype=jnp.float32) * (1.0 / jnp.sqrt(C))

    out = channel_se_layer(x, w1, b1, w2, b2, wc)
    out = jax.block_until_ready(out)

    ref = channel_se_reference(x, w1, b1, w2, b2, wc)
    assert out.shape == (B, Co, H, W), out.shape
    assert jnp.allclose(out, ref, atol=1e-4, rtol=1e-4), "mismatch vs reference"

    print("KERNEL_OK")
</pallas_src>

<mosaic_0001>
module attributes {stable_mosaic.version = 11 : i64} {
  func.func @se_kernel(%arg0: i32, %arg1: memref<1x8x256xf32, #tpu.memory_space<vmem>>, %arg2: memref<2x8xf32, #tpu.memory_space<vmem>>, %arg3: memref<2x1xf32, #tpu.memory_space<vmem>>, %arg4: memref<2x8xf32, #tpu.memory_space<vmem>>, %arg5: memref<1x8xf32, #tpu.memory_space<vmem>>, %arg6: memref<8x8xf32, #tpu.memory_space<vmem>>, %arg7: memref<1x8x256xf32, #tpu.memory_space<vmem>>) attributes {dimension_semantics = [#tpu.dimension_semantics<parallel>], iteration_bounds = array<i64: 2>, scalar_prefetch = 0 : i64, scratch_operands = 0 : i64, tpu.core_type = #tpu.core_type<tc>, window_params = [{transform_indices = @transform_0, window_bounds = array<i64: 1, 8, 256>}, {pipeline_mode = #tpu.pipeline_mode<synchronous>, transform_indices = @transform_1, window_bounds = array<i64: 2, 8>}, {pipeline_mode = #tpu.pipeline_mode<synchronous>, transform_indices = @transform_2, window_bounds = array<i64: 2, 1>}, {pipeline_mode = #tpu.pipeline_mode<synchronous>, transform_indices = @transform_3, window_bounds = array<i64: 2, 8>}, {pipeline_mode = #tpu.pipeline_mode<synchronous>, transform_indices = @transform_4, window_bounds = array<i64: 1, 8>}, {pipeline_mode = #tpu.pipeline_mode<synchronous>, transform_indices = @transform_5, window_bounds = array<i64: 8, 8>}, {transform_indices = @transform_6, window_bounds = array<i64: 1, 8, 256>}]} {
    %c0 = arith.constant 0 : index
    %c0_0 = arith.constant 0 : index
    %c0_1 = arith.constant 0 : index
    %0 = vector.load %arg1[%c0, %c0_0, %c0_1] : memref<1x8x256xf32, #tpu.memory_space<vmem>>, vector<1x8x256xf32>
    %1 = vector.shape_cast %0 : vector<1x8x256xf32> to vector<8x256xf32>
    %cst = arith.constant 3.906250e-03 : f32
    %2 = vector.broadcast %cst : f32 to vector<1x256xf32>
    %cst_2 = arith.constant dense<0.000000e+00> : vector<1x8xf32>
    %3 = tpu.matmul %2, %1, %cst_2 {dimension_numbers = #tpu.dot_dimension_numbers<[1], [1], [0], [0], [0, 0, 1, 0], [], []>} : vector<1x256xf32>, vector<8x256xf32>, vector<1x8xf32> -> vector<1x8xf32>
    %c0_3 = arith.constant 0 : index
    %c0_4 = arith.constant 0 : index
    %4 = vector.load %arg2[%c0_3, %c0_4] : memref<2x8xf32, #tpu.memory_space<vmem>>, vector<2x8xf32>
    %5 = vector.broadcast %3 : vector<1x8xf32> to vector<2x8xf32>
    %6 = arith.mulf %4, %5 : vector<2x8xf32>
    %cst_5 = arith.constant dense<0.000000e+00> : vector<2xf32>
    %7 = vector.multi_reduction <add>, %6, %cst_5 [1] : vector<2x8xf32> to vector<2xf32>
    %8 = vector.shape_cast %7 : vector<2xf32> to vector<2x1xf32>
    %c0_6 = arith.constant 0 : index
    %c0_7 = arith.constant 0 : index
    %9 = vector.load %arg3[%c0_6, %c0_7] : memref<2x1xf32, #tpu.memory_space<vmem>>, vector<2x1xf32>
    %10 = arith.addf %8, %9 : vector<2x1xf32>
    %cst_8 = arith.constant 0.000000e+00 : f32
    %11 = vector.broadcast %cst_8 : f32 to vector<2x1xf32>
    %12 = arith.maximumf %10, %11 : vector<2x1xf32>
    %c0_9 = arith.constant 0 : index
    %c0_10 = arith.constant 0 : index
    %13 = vector.load %arg4[%c0_9, %c0_10] : memref<2x8xf32, #tpu.memory_space<vmem>>, vector<2x8xf32>
    %14 = vector.broadcast %12 : vector<2x1xf32> to vector<2x8xf32>
    %15 = arith.mulf %13, %14 : vector<2x8xf32>
    %cst_11 = arith.constant dense<0.000000e+00> : vector<8xf32>
    %16 = vector.multi_reduction <add>, %15, %cst_11 [0] : vector<2x8xf32> to vector<8xf32>
    %17 = vector.shape_cast %16 : vector<8xf32> to vector<1x8xf32>
    %c0_12 = arith.constant 0 : index
    %c0_13 = arith.constant 0 : index
    %18 = vector.load %arg5[%c0_12, %c0_13] : memref<1x8xf32, #tpu.memory_space<vmem>>, vector<1x8xf32>
    %19 = arith.addf %17, %18 : vector<1x8xf32>
    %20 = arith.negf %19 : vector<1x8xf32>
    %21 = math.exp %20 : vector<1x8xf32>
    %cst_14 = arith.constant 1.000000e+00 : f32
    %22 = vector.broadcast %cst_14 : f32 to vector<1x8xf32>
    %23 = arith.addf %22, %21 : vector<1x8xf32>
    %24 = arith.divf %22, %23 : vector<1x8xf32>
    %c0_15 = arith.constant 0 : index
    %c0_16 = arith.constant 0 : index
    %25 = vector.load %arg6[%c0_15, %c0_16] : memref<8x8xf32, #tpu.memory_space<vmem>>, vector<8x8xf32>
    %26 = vector.broadcast %24 : vector<1x8xf32> to vector<8x8xf32>
    %27 = arith.mulf %25, %26 : vector<8x8xf32>
    %cst_17 = arith.constant dense<0.000000e+00> : vector<8x256xf32>
    %28 = tpu.matmul %27, %1, %cst_17 {dimension_numbers = #tpu.dot_dimension_numbers<[1], [0], [0], [1], [0, 0, 1, 1], [], []>} : vector<8x8xf32>, vector<8x256xf32>, vector<8x256xf32> -> vector<8x256xf32>
    %c0_18 = arith.constant 0 : index
    %c0_19 = arith.constant 0 : index
    %c0_20 = arith.constant 0 : index
    %29 = vector.load %arg7[%c0_18, %c0_19, %c0_20] : memref<1x8x256xf32, #tpu.memory_space<vmem>>, vector<1x8x256xf32>
    %30 = vector.shape_cast %29 : vector<1x8x256xf32> to vector<8x256xf32>
    %31 = vector.shape_cast %28 : vector<8x256xf32> to vector<1x8x256xf32>
    tpu.vector_store %arg7[%c0_18, %c0_19, %c0_20], %31 {strides = array<i32>} : memref<1x8x256xf32, #tpu.memory_space<vmem>>, vector<1x8x256xf32>,
    return
  }
  func.func @transform_0(%arg0: i32) -> (i32, i32, i32) {
    %c0_i32 = arith.constant 0 : i32
    %c0_i32_0 = arith.constant 0 : i32
    %c0_i32_1 = arith.constant 0 : i32
    return %arg0, %c0_i32, %c0_i32_0 : i32, i32, i32
  }
  func.func @transform_1(%arg0: i32) -> (i32, i32) {
    %c0_i32 = arith.constant 0 : i32
    %c0_i32_0 = arith.constant 0 : i32
    %c0_i32_1 = arith.constant 0 : i32
    return %c0_i32, %c0_i32_0 : i32, i32
  }
  func.func @transform_2(%arg0: i32) -> (i32, i32) {
    %c0_i32 = arith.constant 0 : i32
    %c0_i32_0 = arith.constant 0 : i32
    %c0_i32_1 = arith.constant 0 : i32
    return %c0_i32, %c0_i32_0 : i32, i32
  }
  func.func @transform_3(%arg0: i32) -> (i32, i32) {
    %c0_i32 = arith.constant 0 : i32
    %c0_i32_0 = arith.constant 0 : i32
    %c0_i32_1 = arith.constant 0 : i32
    return %c0_i32, %c0_i32_0 : i32, i32
  }
  func.func @transform_4(%arg0: i32) -> (i32, i32) {
    %c0_i32 = arith.constant 0 : i32
    %c0_i32_0 = arith.constant 0 : i32
    %c0_i32_1 = arith.constant 0 : i32
    return %c0_i32, %c0_i32_0 : i32, i32
  }
  func.func @transform_5(%arg0: i32) -> (i32, i32) {
    %c0_i32 = arith.constant 0 : i32
    %c0_i32_0 = arith.constant 0 : i32
    %c0_i32_1 = arith.constant 0 : i32
    return %c0_i32, %c0_i32_0 : i32, i32
  }
  func.func @transform_6(%arg0: i32) -> (i32, i32, i32) {
    %c0_i32 = arith.constant 0 : i32
    %c0_i32_0 = arith.constant 0 : i32
    %c0_i32_1 = arith.constant 0 : i32
    return %arg0, %c0_i32, %c0_i32_0 : i32, i32, i32
  }
}

</mosaic_0001>

<bundles_post_ra>
// kernel: tpu_custom_call.1
= control target key start
LH: loop header
LB: loop body
LE: loop exit
PB: predicated region body
PF: predicated region fallthrough
CT: control target
= control target key end

     0   :  { %11 = vsyncpa [#allocation3], 0  ;;  %s935_s0 = inlined_call_operand.hbm [shape: f32[2,8,256], index: 0, kind: input, shape index: {}]   ;;  %s936_s1 = inlined_call_operand.vmem [shape: f32[2,8], index: 1, kind: input, shape index: {}]   ;;  %s937_s2 = inlined_call_operand.vmem [shape: f32[2,1], index: 2, kind: input, shape index: {}]   ;;  %s938_s3 = inlined_call_operand.vmem [shape: f32[2,8], index: 3, kind: input, shape index: {}]   ;;  %s939_s4 = inlined_call_operand.vmem [shape: f32[1,8], index: 4, kind: input, shape index: {}]   ;;  %s940_s5 = inlined_call_operand.vmem [shape: f32[8,8], index: 5, kind: input, shape index: {}]   ;;  %s941_s6 = inlined_call_operand.hbm [shape: f32[2,8,256], index: 6, kind: output, shape index: {}]  }
   0x1   :  { %13 = vsyncpa [#allocation3 + $0x1], 0 }
   0x2   :  { %14 = vsyncpa [#allocation4], 0 }
   0x3   :  { %16 = vsyncpa [#allocation4 + $0x1], 0  ;;  %s753_s21 = smov 0   ;;  %s755_s22 = smov 0  }
   0x4   :  { %s757_s23 = smov 0   ;;  %s759_s24 = smov 0  }
   0x5 LB: > { %s774_s25 = sadd.s32 4294967295, %s711_s24   ;;  %s543_s26 = sadd.s32 4294967294, %s711_s24   ;;  %s711_s24 = sphi %s759_s24, %s956_s24   ;;  %s707_s23 = sphi %s757_s23, %s955_s23   ;;  %s703_s22 = sphi %s755_s22, %s954_s22   ;;  %s699_s21 = sphi %s753_s21, %s953_s21  }
   0x6   : > { %s778_s27 = sadd.s32 1, %s711_s24   ;;  %s29_s28 = sadd.s32 1, %s707_s23 }
   0x7   : > { %s26_s29 = ssub.s32 %s711_s24, %s778_s27  ;;  %p36_p0 = scmp.ne.s32.totalorder %s707_s23, %s703_s22 }
   0x8   : > { %p27_p1 = scmp.eq.s32.totalorder %s26_s29, 0  ;;  %p37_p2 = scmp.eq.s32.totalorder %s711_s24, 0 }
   0x9   : > { %p42_p3 = scmp.ne.s32.totalorder %s703_s22, %s699_s21  ;;  %p43_p4 = scmp.eq.s32.totalorder %s774_s25, 0 }
   0xa   : > { %s790_s30 = scalar_select %p27_p1, %s707_s23, %s29_s28  }
   0xb   : > { %p792_p5 = por %p37_p2, %p36_p0  ;;  %p796_p6 = por %p43_p4, %p42_p3 }
   0xc   : > { %p171_p7 = scmp.eq.s32.totalorder %s774_s25, 1  ;;  %p177_p8 = scmp.eq.s32.totalorder %s543_s26, 1 }
   0xd   : > { %p573_p10 = scmp.lt.s32.totalorder %s711_s24, 2  ;;  %s212_s11 = sand.u32 1, %s707_s23  }
   0xe   : > { %p803_p11 = por %p171_p7, %p36_p0  ;;  %p807_p12 = por %p177_p8, %p42_p3 }
   0xf   : > { %s559_s12 = sshll.u32 %s711_s24, 8  ;;  %s546_s13 = sshll.u32 %s212_s11, 4 }
  0x10   : > { %s945_s9 = scalar_select %p803_p11, 1, 0 }
  0x11   : > { %s946_s10 = scalar_select %p807_p12, 1, 0 }
  0x12   : > { %s816_s16 = scalar_lea.hbm %s935_s0, %s559_s12  ;;  %s216_s17 = scalar_lea.vmem [#allocation2], %s546_s13 }
  0x13   : > { %s224_s18 = sshll.u32 %s216_s17, 4  ;;  %p820_p13 = pnand %p573_p10, %p792_p5  ;;  %s824_s18 = int_to_ptr.vmem [resolvable:$true] %s224_s18 }
  0x14   : > { %s213_s20 = scalar_lea.sflag [#allocation3], %s212_s11  ;;  %s615_s26 = scalar_lea.hbm %s816_s16, 256 }
  0x15   : > { %p616_p2 = scmp.ne.s32.totalorder %s816_s16, %s615_s26  ;;  %p617_p3 = pneg %p820_p13 }
  0x16   : > { %s620_s7 = scalar_lea.hbm %s935_s0, 512  ;;  %p621_p5 = scmp.lt.u32.totalorder %s816_s16, %s935_s0 }
  0x17   : > { %p618_p4 = pnand %p617_p3, %p616_p2  ;;  %p622_p8 = scmp.lt.u32.totalorder %s620_s7, %s615_s26 }
  0x18   : > { %p624_p9 = scmp.lt.u32.totalorder %s615_s26, %s816_s16 }
  0x19   : > { %p619_p7 = pneg %p618_p4  ;;  %p623_p10 = por %p622_p8, %p621_p5 }
  0x1b   : > { %p625_p0 = por %p624_p9, %p623_p10 }
  0x1d   : > { %p626_p1 = pnand %p625_p0, %p619_p7 }
  0x1f   : > { %629 = shalt.err (!%p626_p1)
}
  0x20   : > { %s630_s11 = scalar_lea.vmem %s824_s18, 256  ;;  %s713_s14 = smov [#allocation2]  }
  0x21   : > { %p631_p2 = scmp.ne.s32.totalorder %s824_s18, %s630_s11  ;;  %s635_s15 = sshll.u32 %s713_s14, 4  ;;  %s636_s15 = int_to_ptr.vmem [resolvable:$false] %s635_s15 }
  0x22   : > { %s637_s17 = scalar_lea.vmem %s636_s15, 512  ;;  %p638_p11 = scmp.lt.s32.totalorder %s824_s18, %s636_s15 }
  0x23   : > { %p633_p4 = pnand %p631_p2, %p617_p3  ;;  %p639_p5 = scmp.lt.s32.totalorder %s637_s17, %s630_s11 }
  0x25   : > { %p634_p12 = pneg %p633_p4  ;;  %p640_p8 = por %p639_p5, %p638_p11 }
  0x27   : > { %p641_p9 = pnand %p640_p8, %p634_p12 }
  0x29   : > { %644 = shalt.err (!%p641_p9)
}
  0x2a   : > { %568 = dma.hbm_to_vmem [thread:$0]  (!%p820_p13), %s816_s16, 256, %s824_s18, %s213_s20  }
  0x2b   : > { %p948_p0 = scmp.lt.s32.totalorder %s711_s24, 3  ;;  %p949_p1 = scmp.ge.s32.totalorder %s711_s24, 1 }
  0x2d   : > { %p230_p3 = pnand %p949_p1, %p948_p0 }
  0x2e   : > { %s858_s26 = sand.u32 (!%p230_p3), 1, %s703_s22  }
  0x2f   : > { %233 = sbr.rel (%p230_p3) target bundleno = 825 (0x339), region = 44  ;;  %s550_s28 = sshll.u32 (!%p230_p3), %s858_s26, 4 }
  0x30   : > { %s236_s29 = scalar_lea.sflag (!%p230_p3), [#allocation3], %s858_s26  ;;  %s239_s19 = scalar_lea.vmem (!%p230_p3), [#allocation2], %s550_s28 }
  0x36   : > { %690 = dma.done.wait (%p796_p6), %s236_s29, 256  }
  0x37   : > { %692 = vsyncadd (%p796_p6), %s236_s29, 4294967040  ;;  %v714_v0 = vmov 0.00390625   ;;  %v269_v1 = vld [vmem:[%s239_s19 + $0x8] sm:$0xff]  ;;  %v268_v2 = vld [vmem:[%s239_s19] sm:$0xff]  ;;  %v341_v3 = vlaneseq  ;;  %vm346_vm0 = vcmask 58368   ;;  %v715_v12 = vmov 0  }
  0x38   : > { %334 = vmatprep.mubr.f32.mxu0 %v714_v0  ;;  %270 = vmatprep.subr.mxu0 %v269_v1  ;;  %v340_v7 = vld [vmem:[%s936_s1] sm:$0x3]  ;;  %v716_v17 = vmov 0.0   ;;  %vm381_vm1 = vcmask 64512   ;;  %s267_s17 = scalar_lea.vmem [#allocation5], %s550_s28  ;;  %s560_s19 = sshll.u32 %s774_s25, 8 }
  0x39   : > { %385 = vmatprep.subr.mxu1 %v269_v1  ;;  %271 = vmatpush1.xpose.msra.mxu0 %v268_v2  ;;  %v342_v4 = vshrl.u32 %v341_v3, 7  ;;  %v350_v13 = vld [vmem:[%s937_s2] sm:$0x3]  ;;  %s473_s29 = sshll.u32 %s267_s17, 4  ;;  %s893_s8 = scalar_lea.hbm %s941_s6, %s560_s19  ;;  %s888_s29 = int_to_ptr.vmem [resolvable:$true] %s473_s29 }
  0x3a   : > { %386 = vmatpush1.msra.mxu1 %v268_v2  ;;  %610 = vset.pattern.permute.xlu0 %v715_v12  ;;  %v353_v18 = vld [vmem:[%s938_s3] sm:$0x3]  ;;  %s459_s20 = scalar_lea.sflag [#allocation4], %s858_s26  ;;  %s645_s7 = scalar_lea.vmem %s888_s29, 256 }
  0x3b   : > { %v343_v5 = vsub.s32 0, %v342_v4  ;;  %449 = vmatprep.mubr.f32.mxu1 %v716_v17  ;;  %v367_v27 = vld [vmem:[%s939_s4] sm:$0x1]  ;;  %p646_p6 = scmp.ne.s32.totalorder %s888_s29, %s645_s7  ;;  %p950_p11 = scmp.ne.s32.totalorder %s945_s9, 0 }
  0x3c   : > { %335 = vmatmul.mubr.f32.vlgmr.msra.gmra.mrb[0].mxu0 %v714_v0  ;;  %v375_v34 = vld [vmem:[%s940_s5] sm:$0xff]  ;;  %s717_s25 = smov [#allocation5]  }
  0x3d   : > { %p647_p12 = pnand %p646_p6, %p950_p11  ;;  %s649_s28 = sshll.u32 %s717_s25, 4  ;;  %s650_s28 = int_to_ptr.vmem [resolvable:$false] %s649_s28 }
  0x3e   : > { %s651_s12 = scalar_lea.vmem %s650_s28, 512  ;;  %p652_p7 = scmp.lt.s32.totalorder %s888_s29, %s650_s28 }
  0x3f   : > { %p648_p13 = pneg %p647_p12  ;;  %p653_p10 = scmp.lt.s32.totalorder %s651_s12, %s645_s7 }
  0x41   : > { %p654_p2 = por %p653_p10, %p652_p7 }
  0x43   : > { %p655_p4 = pnand %p654_p2, %p648_p13 }
 0x10f   : > { %v336_v6 = vpop.f32.mrb[0].mxu0 }
 0x110   : > { %v344_v8 = vrot.slane %v336_v6, %v343_v5  ;;  %v338_v9 = vpop.f32.mrb[1].mxu0 }
 0x112   : > { %v345_v10 = vmul.f32 %v344_v8, %v340_v7 }
 0x114   : > { %v347_v11 = vsel %vm346_vm0, %v345_v10, 0.0 }
 0x115   : > { %348 = vadd.xlane.f32.xlu0 %v347_v11 }
 0x1a2   : > { %v349_v14 = vpop.xlane.xlu0 %348 }
 0x1a3   : > { %v351_v15 = vadd.f32 %v350_v13, %v349_v14 }
 0x1a5   : > { %v352_v16 = vmax.f32 %v351_v15, 0.0 }
 0x1a7   : > { %356 = vperm.xlu0 %610, %v352_v16  }
 0x226   : > { %v357_v19 = vpop.permute.xlu0 %356 }
 0x227   : > { %v359_v20 = vmul.f32 %v357_v19, %v353_v18 }
 0x229   : > { %v360_v21 = vsel %vm346_vm0, %v359_v20, 0.0 }
 0x22a   : > { %v361_v22 = vrot.slane %v360_v21, 4 }
 0x22c   : > { %v362_v23 = vadd.f32 %v361_v22, %v360_v21 }
 0x22e   : > { %v363_v24 = vrot.slane %v362_v23, 2 }
 0x230   : > { %v364_v25 = vadd.f32 %v363_v24, %v362_v23 }
 0x232   : > { %v365_v26 = vrot.slane %v364_v25, 1 }
 0x234   : > { %v366_v28 = vadd.f32 %v365_v26, %v364_v25 }
 0x236   : > { %v368_v29 = vadd.f32 %v367_v27, %v366_v28 }
 0x238   : > { %v552_v30 = vmul.f32 -1.442695, %v368_v29 }
 0x23a   : > { %611 = vpow2.f32 %v552_v30 }
 0x244   : > { %v612_v31 = vpop.eup %611 }
 0x245   : > { %v372_v32 = vadd.f32 1.0, %v612_v31 }
 0x247   : > { %613 = vrcp.f32 %v372_v32 }
 0x251   : > { %v614_v33 = vpop.eup %613 }
 0x252   : > { %v379_v35 = vrot.slane %v614_v33, %v343_v5 }
 0x254   : > { %v380_v36 = vmul.f32 %v379_v35, %v375_v34 }
 0x256   : > { %553 = vmatmul.mubr.msk.f32.vlgmr.msra.gmra.mrb[0].mxu1 %vm381_vm1, %v380_v36 }
 0x329   : > { %v451_v37 = vpop.f32.mrb[0].mxu1 }
 0x32a   : > { %456 = vst [vmem:[%s267_s17] sm:$0xff] %v451_v37  ;;  %v453_v38 = vpop.f32.mrb[1].mxu1 }
 0x32b   : > { %457 = vst [vmem:[%s267_s17 + $0x8] sm:$0xff] %v453_v38 }
 0x32c   : > { %658 = shalt.err (!%p655_p4)
}
 0x32d   : > { %s659_s26 = scalar_lea.hbm %s893_s8, 256  ;;  %s663_s14 = scalar_lea.hbm %s941_s6, 512 }
 0x32e   : > { %p660_p5 = scmp.ne.s32.totalorder %s893_s8, %s659_s26  ;;  %p664_p0 = scmp.lt.u32.totalorder %s893_s8, %s941_s6 }
 0x32f   : > { %p665_p1 = scmp.lt.u32.totalorder %s663_s14, %s659_s26  ;;  %p667_p6 = scmp.lt.u32.totalorder %s659_s26, %s893_s8 }
 0x330   : > { %p661_p8 = pnand %p660_p5, %p950_p11 }
 0x331   : > { %p666_p3 = por %p665_p1, %p664_p0 }
 0x332   : > { %p662_p9 = pneg %p661_p8 }
 0x333   : > { %p668_p12 = por %p667_p6, %p666_p3 }
 0x335   : > { %p669_p13 = pnand %p668_p12, %p662_p9 }
 0x337   : > { %672 = shalt.err (!%p669_p13)
}
 0x338   : > { %563 = dma.vmem_to_hbm [thread:$0]  (%p950_p11), %s888_s29, 256, %s893_s8, %s459_s20  }
 0x339 PF: > { %s485_s19 = sand.u32 1, %s699_s21   ;;  %p951_p7 = scmp.ne.s32.totalorder %s946_s10, 0 }
 0x33a   : > { %p952_p10 = scmp.ge.s32.totalorder %s711_s24, 2  ;;  %s486_s16 = scalar_lea.sflag [#allocation4], %s485_s19 }
 0x33c   : > { %p570_p2 = pnand %p952_p10, %p951_p7 }
 0x33e   : > { %694 = dma.done.wait (!%p570_p2), %s486_s16, 256  }
 0x33f   : > { %696 = vsyncadd (!%p570_p2), %s486_s16, 4294967040  ;;  %p19_p4 = scmp.ge.s32.totalorder %s778_s27, 4   ;;  %s953_s21 = smov %s703_s22 }
 0x340   : > { %s954_s22 = smov %s707_s23  ;;  %s955_s23 = smov %s790_s30 }
 0x341   : > { %s956_s24 = smov %s778_s27  ;;  %21 = sbr.rel (!%p19_p4) target bundleno = 5 (0x5), region = 89 }
 0x348   :  { %491 = vsyncpa [#allocation3], 1 }
 0x349   :  { %493 = vsyncpa [#allocation3 + $0x1], 1 }
 0x34a   :  { %494 = vsyncpa [#allocation4], 1 }
 0x34b   :  { %496 = vsyncpa [#allocation4 + $0x1], 1 }

</bundles_post_ra>
